<compile_context>
chip_gen: v7x
topology: tpu7x:2x2x1
jax: 0.10.0
libtpu: 0.0.40
codegen_flags: <defaults>
</compile_context>

<pallas_src>
import jax
import jax.numpy as jnp
from jax.experimental import pallas as pl
from jax.experimental.pallas import tpu as pltpu

# ----------------------------- dimensions -----------------------------------
B = 256          # batch; lives on the lane axis (one grid step)
IN_X, HID_X, LAT_X = 16, 32, 8
IN_Y, HID_Y, LAT_Y = 16, 32, 8

W_COLS = 32      # every transposed weight block padded to 32 lanes (K dim)
IN_SLAB = IN_X + IN_Y + LAT_X + LAT_Y          # 48 feature rows
OUT_ROWS = 96                                   # output slab feature rows
W_ROWS = 256
B_ROWS = 192

# input slab row layout (feature-major):  x 0:16 | y 16:32 | eps_x 32:40 | eps_y 40:48
# output slab row layout (feature-major):
#   out_x 0:16 | z_x 16:24 | mean_x 24:32 | log_var_x 32:40 | var_x 40:48
#   out_y 48:64| z_y 64:72 | mean_y 72:80 | log_var_y 80:88 | var_y 88:96
# return-order (matches the PyTorch forward) -> row slices:
_OUT_ROWS_MAP = [
    (0, 16),    # output_x
    (16, 24),   # z_x
    (24, 32),   # mean_x
    (40, 48),   # var_x
    (32, 40),   # log_var_x
    (48, 64),   # output_y
    (64, 72),   # z_y
    (72, 80),   # mean_y
    (88, 96),   # var_y
    (80, 88),   # log_var_y
]

# weight slab row layout (all transposed, (out_dim, in_dim->32) zero-padded):
#    0: 32  W_ex^T      (32, 16->32)
#   32: 48  W_head_x^T  (16, 32)        fused mean||log_var
#   48: 80  W_dx1^T     (32,  8->32)
#   80: 96  W_dx2^T     (16, 32)
#   96:128  W_ey^T      (32, 16->32)    y-only encoder half
#  128:160  W_ec^T      (32,  8->32)    z_x conditional encoder half
#  160:176  W_head_y^T  (16, 32)        fused mean||log_var
#  176:208  W_dy1^T     (32,  8->32)    z_y decoder half
#  208:240  W_dc^T      (32,  8->32)    z_x conditional decoder half
#  240:256  W_dy2^T     (16, 32)
# bias slab row layout (column vectors, f32):
#    0: 32 b_ex | 32:48 b_head_x | 48:80 b_dx1 | 80:96 b_dx2
#   96:128 b_ey | 128:144 b_head_y | 144:176 b_dy1 | 176:192 b_dy2


# ------------------------------- kernel -------------------------------------
def _cor_cond_vae_kernel(in_ref, w_ref, b_ref, out_ref):
    f32 = jnp.float32
    mmdt = w_ref.dtype

    def lrelu(h):
        return jnp.maximum(h, 0.2 * h)

    def mm(lo, hi, act, k=W_COLS):
        # (out, k) @ (k, B) -> (out, B), f32 accumulate
        return jnp.dot(w_ref[lo:hi, 0:k], act.astype(mmdt),
                       preferred_element_type=f32)

    # Weight lane-padding is zero, so a 32-row activation window whose extra
    # rows hold unrelated features contributes exactly nothing.
    xy = in_ref[0:32, :]        # x (0:16) | y (16:32)   -> encoder_x input
    y_e = in_ref[16:48, :]      # y (0:16) | eps (16:32) -> y-only encoder input
    eps_x = in_ref[32:40, :]
    eps_y = in_ref[40:48, :]

    # ---------------- VAE_x ----------------
    hx = lrelu(mm(0, 32, xy) + b_ref[0:32, :])                      # (32, B)
    head_x = mm(32, 48, hx) + b_ref[32:48, :]                       # (16, B)
    out_ref[24:40, :] = head_x                                      # mean_x | log_var_x
    mean_x = head_x[0:8, :]
    log_var_x = head_x[8:16, :]
    std_x = jnp.exp(0.5 * log_var_x)
    out_ref[40:48, :] = std_x * std_x                               # var_x
    z_x = mean_x + std_x * eps_x
    out_ref[16:24, :] = z_x

    # conditional halves that only depend on z_x — independent MXU pushes that
    # overlap with the x-decoder / y-encoder chain
    hy_cond = mm(128, 160, z_x, k=LAT_X)                            # (32, B)
    hdy_cond = mm(208, 240, z_x, k=LAT_X)                           # (32, B)

    hdx = lrelu(mm(48, 80, z_x, k=LAT_X) + b_ref[48:80, :])         # (32, B)
    out_ref[0:16, :] = mm(80, 96, hdx) + b_ref[80:96, :]            # out_x

    # ---------------- CondVAE_y (condition = z_x) ----------------
    hy_pre = mm(96, 128, y_e) + b_ref[96:128, :]                    # y-only half
    hy = lrelu(hy_pre + hy_cond)                                    # (32, B)
    head_y = mm(160, 176, hy) + b_ref[128:144, :]                   # (16, B)
    out_ref[72:88, :] = head_y                                      # mean_y | log_var_y
    mean_y = head_y[0:8, :]
    log_var_y = head_y[8:16, :]
    std_y = jnp.exp(0.5 * log_var_y)
    out_ref[88:96, :] = std_y * std_y                               # var_y
    z_y = mean_y + std_y * eps_y
    out_ref[64:72, :] = z_y

    hdy = lrelu(mm(176, 208, z_y, k=LAT_Y) + b_ref[144:176, :] + hdy_cond)
    out_ref[48:64, :] = mm(240, 256, hdy) + b_ref[176:192, :]       # out_y


# ------------------------------- wrapper -------------------------------------
def _pad_lanes(a, width=W_COLS):
    return jnp.pad(a, ((0, 0), (0, width - a.shape[1])))


def pack_params(p, matmul_dtype=jnp.float32):
    """Transpose to feature-major, fuse heads, pack into one W slab + one b slab."""
    (wex, bex, wmx, bmx, wlx, blx, wdx1, bdx1, wdx2, bdx2,
     wey, wec, bey, wmy, bmy, wly, bly, wdy1, wdc, bdy1, wdy2, bdy2) = p

    w_head_x = jnp.concatenate([wmx, wlx], axis=1)        # (32, 16)
    w_head_y = jnp.concatenate([wmy, wly], axis=1)        # (32, 16)

    w_blocks = [wex.T, w_head_x.T, wdx1.T, wdx2.T,
                wey.T, wec.T, w_head_y.T, wdy1.T, wdc.T, wdy2.T]
    w_slab = jnp.concatenate([_pad_lanes(w) for w in w_blocks],
                             axis=0).astype(matmul_dtype)            # (256, 32)

    b_head_x = jnp.concatenate([bmx, blx], axis=1)         # (1, 16)
    b_head_y = jnp.concatenate([bmy, bly], axis=1)         # (1, 16)
    b_blocks = [bex, b_head_x, bdx1, bdx2, bey, b_head_y, bdy1, bdy2]
    b_slab = jnp.concatenate([b.reshape(-1, 1) for b in b_blocks],
                             axis=0).astype(jnp.float32)              # (192, 1)
    return w_slab, b_slab


def cor_cond_vae_forward(x, y, eps_x, eps_y, params, matmul_dtype=jnp.float32):
    """Fused forward of CorCondVAE (feature-major, single grid step)."""
    batch = x.shape[0]
    w_slab, b_slab = pack_params(params, matmul_dtype)
    in_slab = jnp.concatenate([x, y, eps_x, eps_y], axis=1).T        # (48, batch)

    out_slab = pl.pallas_call(
        _cor_cond_vae_kernel,
        out_shape=jax.ShapeDtypeStruct((OUT_ROWS, batch), jnp.float32),
        grid_spec=pltpu.PrefetchScalarGridSpec(
            num_scalar_prefetch=0,
            grid=(1,),
            in_specs=[
                pl.BlockSpec((IN_SLAB, batch), lambda i: (0, 0)),    # activations
                pl.BlockSpec((W_ROWS, W_COLS), lambda i: (0, 0)),    # weights (resident)
                pl.BlockSpec((B_ROWS, 1), lambda i: (0, 0)),         # biases  (resident)
            ],
            out_specs=pl.BlockSpec((OUT_ROWS, batch), lambda i: (0, 0)),
        ),
        compiler_params=pltpu.CompilerParams(
            dimension_semantics=("arbitrary",)),
    )(in_slab, w_slab, b_slab)

    return tuple(out_slab[lo:hi, :].T for lo, hi in _OUT_ROWS_MAP)


# ------------------------ deterministic param init ---------------------------
def init_params(key):
    shapes = [
        # VAE_x
        (IN_X, HID_X), (1, HID_X),                    # encoder L1
        (HID_X, LAT_X), (1, LAT_X),                   # mean head
        (HID_X, LAT_X), (1, LAT_X),                   # log_var head
        (LAT_X, HID_X), (1, HID_X),                   # decoder L1
        (HID_X, IN_X), (1, IN_X),                     # decoder L2
        # CondVAE_y
        (IN_Y, HID_Y), (LAT_X, HID_Y), (1, HID_Y),    # encoder L1 (y, cond, bias)
        (HID_Y, LAT_Y), (1, LAT_Y),                   # mean head
        (HID_Y, LAT_Y), (1, LAT_Y),                   # log_var head
        (LAT_Y, HID_Y), (LAT_X, HID_Y), (1, HID_Y),   # decoder L1 (z, cond, bias)
        (HID_Y, IN_Y), (1, IN_Y),                     # decoder L2
    ]
    keys = jax.random.split(key, len(shapes))
    return [0.05 * jax.random.normal(k, s, dtype=jnp.float32)
            for k, s in zip(keys, shapes)]


# --------------------------- pure-JAX reference -------------------------------
def reference_forward(x, y, eps_x, eps_y, p):
    (wex, bex, wmx, bmx, wlx, blx, wdx1, bdx1, wdx2, bdx2,
     wey, wec, bey, wmy, bmy, wly, bly, wdy1, wdc, bdy1, wdy2, bdy2) = p
    lrelu = lambda h: jnp.where(h > 0, h, 0.2 * h)
    hx = lrelu(x @ wex + bex)
    mean_x = hx @ wmx + bmx
    log_var_x = hx @ wlx + blx
    var_x = jnp.exp(log_var_x)
    z_x = mean_x + jnp.exp(0.5 * log_var_x) * eps_x
    out_x = lrelu(z_x @ wdx1 + bdx1) @ wdx2 + bdx2
    hy = lrelu(y @ wey + z_x @ wec + bey)
    mean_y = hy @ wmy + bmy
    log_var_y = hy @ wly + bly
    var_y = jnp.exp(log_var_y)
    z_y = mean_y + jnp.exp(0.5 * log_var_y) * eps_y
    out_y = lrelu(z_y @ wdy1 + z_x @ wdc + bdy1) @ wdy2 + bdy2
    return (out_x, z_x, mean_x, var_x, log_var_x,
            out_y, z_y, mean_y, var_y, log_var_y)


# --------------------------------- main ---------------------------------------
if __name__ == "__main__":
    key = jax.random.PRNGKey(0)
    k_x, k_y, k_ex, k_ey, k_p = jax.random.split(key, 5)

    x = jax.random.normal(k_x, (B, IN_X), dtype=jnp.float32)
    y = jax.random.normal(k_y, (B, IN_Y), dtype=jnp.float32)
    # reparameterization noise (torch.randn_like) passed in for determinism
    eps_x = jax.random.normal(k_ex, (B, LAT_X), dtype=jnp.float32)
    eps_y = jax.random.normal(k_ey, (B, LAT_Y), dtype=jnp.float32)

    params = init_params(k_p)

    outs = cor_cond_vae_forward(x, y, eps_x, eps_y, params)
    outs = jax.block_until_ready(outs)

    refs = reference_forward(x, y, eps_x, eps_y, params)
    for o, r in zip(outs, refs):
        assert o.shape == r.shape and o.dtype == r.dtype
        assert jnp.allclose(o, r, atol=1e-5, rtol=1e-5), "mismatch vs reference"

    print("KERNEL_OK")
</pallas_src>

<mosaic_0001>
module attributes {stable_mosaic.version = 11 : i64} {
  func.func @_cor_cond_vae_kernel(%arg0: i32, %arg1: memref<48x256xf32, #tpu.memory_space<vmem>>, %arg2: memref<256x32xf32, #tpu.memory_space<vmem>>, %arg3: memref<192x1xf32, #tpu.memory_space<vmem>>, %arg4: memref<96x256xf32, #tpu.memory_space<vmem>>) attributes {dimension_semantics = [#tpu.dimension_semantics<arbitrary>], iteration_bounds = array<i64: 1>, scalar_prefetch = 0 : i64, scratch_operands = 0 : i64, tpu.core_type = #tpu.core_type<tc>, window_params = [{pipeline_mode = #tpu.pipeline_mode<synchronous>, transform_indices = @transform_0, window_bounds = array<i64: 48, 256>}, {pipeline_mode = #tpu.pipeline_mode<synchronous>, transform_indices = @transform_1, window_bounds = array<i64: 256, 32>}, {pipeline_mode = #tpu.pipeline_mode<synchronous>, transform_indices = @transform_2, window_bounds = array<i64: 192, 1>}, {pipeline_mode = #tpu.pipeline_mode<synchronous>, transform_indices = @transform_3, window_bounds = array<i64: 96, 256>}]} {
    %c0 = arith.constant 0 : index
    %c0_0 = arith.constant 0 : index
    %0 = vector.load %arg1[%c0, %c0_0] : memref<48x256xf32, #tpu.memory_space<vmem>>, vector<32x256xf32>
    %c16 = arith.constant 16 : index
    %c0_1 = arith.constant 0 : index
    %1 = vector.load %arg1[%c16, %c0_1] : memref<48x256xf32, #tpu.memory_space<vmem>>, vector<32x256xf32>
    %c32 = arith.constant 32 : index
    %c0_2 = arith.constant 0 : index
    %2 = vector.load %arg1[%c32, %c0_2] : memref<48x256xf32, #tpu.memory_space<vmem>>, vector<8x256xf32>
    %c40 = arith.constant 40 : index
    %c0_3 = arith.constant 0 : index
    %3 = vector.load %arg1[%c40, %c0_3] : memref<48x256xf32, #tpu.memory_space<vmem>>, vector<8x256xf32>
    %c0_4 = arith.constant 0 : index
    %c0_5 = arith.constant 0 : index
    %4 = vector.load %arg2[%c0_4, %c0_5] : memref<256x32xf32, #tpu.memory_space<vmem>>, vector<32x32xf32>
    %cst = arith.constant dense<0.000000e+00> : vector<32x256xf32>
    %5 = tpu.matmul %4, %0, %cst {dimension_numbers = #tpu.dot_dimension_numbers<[1], [0], [0], [1], [0, 0, 1, 1], [], []>} : vector<32x32xf32>, vector<32x256xf32>, vector<32x256xf32> -> vector<32x256xf32>
    %c0_6 = arith.constant 0 : index
    %c0_7 = arith.constant 0 : index
    %6 = vector.load %arg3[%c0_6, %c0_7] : memref<192x1xf32, #tpu.memory_space<vmem>>, vector<32x1xf32>
    %7 = vector.broadcast %6 : vector<32x1xf32> to vector<32x256xf32>
    %8 = arith.addf %5, %7 : vector<32x256xf32>
    %cst_8 = arith.constant 2.000000e-01 : f32
    %9 = vector.broadcast %cst_8 : f32 to vector<32x256xf32>
    %10 = arith.mulf %9, %8 : vector<32x256xf32>
    %11 = arith.maximumf %8, %10 : vector<32x256xf32>
    %c32_9 = arith.constant 32 : index
    %c0_10 = arith.constant 0 : index
    %12 = vector.load %arg2[%c32_9, %c0_10] : memref<256x32xf32, #tpu.memory_space<vmem>>, vector<16x32xf32>
    %cst_11 = arith.constant dense<0.000000e+00> : vector<16x256xf32>
    %13 = tpu.matmul %12, %11, %cst_11 {dimension_numbers = #tpu.dot_dimension_numbers<[1], [0], [0], [1], [0, 0, 1, 1], [], []>} : vector<16x32xf32>, vector<32x256xf32>, vector<16x256xf32> -> vector<16x256xf32>
    %c32_12 = arith.constant 32 : index
    %c0_13 = arith.constant 0 : index
    %14 = vector.load %arg3[%c32_12, %c0_13] : memref<192x1xf32, #tpu.memory_space<vmem>>, vector<16x1xf32>
    %15 = vector.broadcast %14 : vector<16x1xf32> to vector<16x256xf32>
    %16 = arith.addf %13, %15 : vector<16x256xf32>
    %c24 = arith.constant 24 : index
    %c0_14 = arith.constant 0 : index
    %17 = vector.load %arg4[%c24, %c0_14] : memref<96x256xf32, #tpu.memory_space<vmem>>, vector<16x256xf32>
    tpu.vector_store %arg4[%c24, %c0_14], %16 {strides = array<i32>} : memref<96x256xf32, #tpu.memory_space<vmem>>, vector<16x256xf32>,
    %18 = vector.extract_strided_slice %16 {offsets = [0, 0], sizes = [8, 256], strides = [1, 1]} : vector<16x256xf32> to vector<8x256xf32>
    %19 = vector.extract_strided_slice %16 {offsets = [8, 0], sizes = [8, 256], strides = [1, 1]} : vector<16x256xf32> to vector<8x256xf32>
    %cst_15 = arith.constant 5.000000e-01 : f32
    %20 = vector.broadcast %cst_15 : f32 to vector<8x256xf32>
    %21 = arith.mulf %20, %19 : vector<8x256xf32>
    %22 = math.exp %21 : vector<8x256xf32>
    %23 = arith.mulf %22, %22 : vector<8x256xf32>
    %c40_16 = arith.constant 40 : index
    %c0_17 = arith.constant 0 : index
    %24 = vector.load %arg4[%c40_16, %c0_17] : memref<96x256xf32, #tpu.memory_space<vmem>>, vector<8x256xf32>
    tpu.vector_store %arg4[%c40_16, %c0_17], %23 {strides = array<i32>} : memref<96x256xf32, #tpu.memory_space<vmem>>, vector<8x256xf32>,
    %25 = arith.mulf %22, %2 : vector<8x256xf32>
    %26 = arith.addf %18, %25 : vector<8x256xf32>
    %c16_18 = arith.constant 16 : index
    %c0_19 = arith.constant 0 : index
    %27 = vector.load %arg4[%c16_18, %c0_19] : memref<96x256xf32, #tpu.memory_space<vmem>>, vector<8x256xf32>
    tpu.vector_store %arg4[%c16_18, %c0_19], %26 {strides = array<i32>} : memref<96x256xf32, #tpu.memory_space<vmem>>, vector<8x256xf32>,
    %c128 = arith.constant 128 : index
    %c0_20 = arith.constant 0 : index
    %28 = vector.load %arg2[%c128, %c0_20] : memref<256x32xf32, #tpu.memory_space<vmem>>, vector<32x8xf32>
    %cst_21 = arith.constant dense<0.000000e+00> : vector<32x256xf32>
    %29 = tpu.matmul %28, %26, %cst_21 {dimension_numbers = #tpu.dot_dimension_numbers<[1], [0], [0], [1], [0, 0, 1, 1], [], []>} : vector<32x8xf32>, vector<8x256xf32>, vector<32x256xf32> -> vector<32x256xf32>
    %c208 = arith.constant 208 : index
    %c0_22 = arith.constant 0 : index
    %30 = vector.load %arg2[%c208, %c0_22] : memref<256x32xf32, #tpu.memory_space<vmem>>, vector<32x8xf32>
    %cst_23 = arith.constant dense<0.000000e+00> : vector<32x256xf32>
    %31 = tpu.matmul %30, %26, %cst_23 {dimension_numbers = #tpu.dot_dimension_numbers<[1], [0], [0], [1], [0, 0, 1, 1], [], []>} : vector<32x8xf32>, vector<8x256xf32>, vector<32x256xf32> -> vector<32x256xf32>
    %c48 = arith.constant 48 : index
    %c0_24 = arith.constant 0 : index
    %32 = vector.load %arg2[%c48, %c0_24] : memref<256x32xf32, #tpu.memory_space<vmem>>, vector<32x8xf32>
    %cst_25 = arith.constant dense<0.000000e+00> : vector<32x256xf32>
    %33 = tpu.matmul %32, %26, %cst_25 {dimension_numbers = #tpu.dot_dimension_numbers<[1], [0], [0], [1], [0, 0, 1, 1], [], []>} : vector<32x8xf32>, vector<8x256xf32>, vector<32x256xf32> -> vector<32x256xf32>
    %c48_26 = arith.constant 48 : index
    %c0_27 = arith.constant 0 : index
    %34 = vector.load %arg3[%c48_26, %c0_27] : memref<192x1xf32, #tpu.memory_space<vmem>>, vector<32x1xf32>
    %35 = vector.broadcast %34 : vector<32x1xf32> to vector<32x256xf32>
    %36 = arith.addf %33, %35 : vector<32x256xf32>
    %cst_28 = arith.constant 2.000000e-01 : f32
    %37 = vector.broadcast %cst_28 : f32 to vector<32x256xf32>
    %38 = arith.mulf %37, %36 : vector<32x256xf32>
    %39 = arith.maximumf %36, %38 : vector<32x256xf32>
    %c80 = arith.constant 80 : index
    %c0_29 = arith.constant 0 : index
    %40 = vector.load %arg2[%c80, %c0_29] : memref<256x32xf32, #tpu.memory_space<vmem>>, vector<16x32xf32>
    %cst_30 = arith.constant dense<0.000000e+00> : vector<16x256xf32>
    %41 = tpu.matmul %40, %39, %cst_30 {dimension_numbers = #tpu.dot_dimension_numbers<[1], [0], [0], [1], [0, 0, 1, 1], [], []>} : vector<16x32xf32>, vector<32x256xf32>, vector<16x256xf32> -> vector<16x256xf32>
    %c80_31 = arith.constant 80 : index
    %c0_32 = arith.constant 0 : index
    %42 = vector.load %arg3[%c80_31, %c0_32] : memref<192x1xf32, #tpu.memory_space<vmem>>, vector<16x1xf32>
    %43 = vector.broadcast %42 : vector<16x1xf32> to vector<16x256xf32>
    %44 = arith.addf %41, %43 : vector<16x256xf32>
    %c0_33 = arith.constant 0 : index
    %c0_34 = arith.constant 0 : index
    %45 = vector.load %arg4[%c0_33, %c0_34] : memref<96x256xf32, #tpu.memory_space<vmem>>, vector<16x256xf32>
    tpu.vector_store %arg4[%c0_33, %c0_34], %44 {strides = array<i32>} : memref<96x256xf32, #tpu.memory_space<vmem>>, vector<16x256xf32>,
    %c96 = arith.constant 96 : index
    %c0_35 = arith.constant 0 : index
    %46 = vector.load %arg2[%c96, %c0_35] : memref<256x32xf32, #tpu.memory_space<vmem>>, vector<32x32xf32>
    %cst_36 = arith.constant dense<0.000000e+00> : vector<32x256xf32>
    %47 = tpu.matmul %46, %1, %cst_36 {dimension_numbers = #tpu.dot_dimension_numbers<[1], [0], [0], [1], [0, 0, 1, 1], [], []>} : vector<32x32xf32>, vector<32x256xf32>, vector<32x256xf32> -> vector<32x256xf32>
    %c96_37 = arith.constant 96 : index
    %c0_38 = arith.constant 0 : index
    %48 = vector.load %arg3[%c96_37, %c0_38] : memref<192x1xf32, #tpu.memory_space<vmem>>, vector<32x1xf32>
    %49 = vector.broadcast %48 : vector<32x1xf32> to vector<32x256xf32>
    %50 = arith.addf %47, %49 : vector<32x256xf32>
    %51 = arith.addf %50, %29 : vector<32x256xf32>
    %cst_39 = arith.constant 2.000000e-01 : f32
    %52 = vector.broadcast %cst_39 : f32 to vector<32x256xf32>
    %53 = arith.mulf %52, %51 : vector<32x256xf32>
    %54 = arith.maximumf %51, %53 : vector<32x256xf32>
    %c160 = arith.constant 160 : index
    %c0_40 = arith.constant 0 : index
    %55 = vector.load %arg2[%c160, %c0_40] : memref<256x32xf32, #tpu.memory_space<vmem>>, vector<16x32xf32>
    %cst_41 = arith.constant dense<0.000000e+00> : vector<16x256xf32>
    %56 = tpu.matmul %55, %54, %cst_41 {dimension_numbers = #tpu.dot_dimension_numbers<[1], [0], [0], [1], [0, 0, 1, 1], [], []>} : vector<16x32xf32>, vector<32x256xf32>, vector<16x256xf32> -> vector<16x256xf32>
    %c128_42 = arith.constant 128 : index
    %c0_43 = arith.constant 0 : index
    %57 = vector.load %arg3[%c128_42, %c0_43] : memref<192x1xf32, #tpu.memory_space<vmem>>, vector<16x1xf32>
    %58 = vector.broadcast %57 : vector<16x1xf32> to vector<16x256xf32>
    %59 = arith.addf %56, %58 : vector<16x256xf32>
    %c72 = arith.constant 72 : index
    %c0_44 = arith.constant 0 : index
    %60 = vector.load %arg4[%c72, %c0_44] : memref<96x256xf32, #tpu.memory_space<vmem>>, vector<16x256xf32>
    tpu.vector_store %arg4[%c72, %c0_44], %59 {strides = array<i32>} : memref<96x256xf32, #tpu.memory_space<vmem>>, vector<16x256xf32>,
    %61 = vector.extract_strided_slice %59 {offsets = [0, 0], sizes = [8, 256], strides = [1, 1]} : vector<16x256xf32> to vector<8x256xf32>
    %62 = vector.extract_strided_slice %59 {offsets = [8, 0], sizes = [8, 256], strides = [1, 1]} : vector<16x256xf32> to vector<8x256xf32>
    %cst_45 = arith.constant 5.000000e-01 : f32
    %63 = vector.broadcast %cst_45 : f32 to vector<8x256xf32>
    %64 = arith.mulf %63, %62 : vector<8x256xf32>
    %65 = math.exp %64 : vector<8x256xf32>
    %66 = arith.mulf %65, %65 : vector<8x256xf32>
    %c88 = arith.constant 88 : index
    %c0_46 = arith.constant 0 : index
    %67 = vector.load %arg4[%c88, %c0_46] : memref<96x256xf32, #tpu.memory_space<vmem>>, vector<8x256xf32>
    tpu.vector_store %arg4[%c88, %c0_46], %66 {strides = array<i32>} : memref<96x256xf32, #tpu.memory_space<vmem>>, vector<8x256xf32>,
    %68 = arith.mulf %65, %3 : vector<8x256xf32>
    %69 = arith.addf %61, %68 : vector<8x256xf32>
    %c64 = arith.constant 64 : index
    %c0_47 = arith.constant 0 : index
    %70 = vector.load %arg4[%c64, %c0_47] : memref<96x256xf32, #tpu.memory_space<vmem>>, vector<8x256xf32>
    tpu.vector_store %arg4[%c64, %c0_47], %69 {strides = array<i32>} : memref<96x256xf32, #tpu.memory_space<vmem>>, vector<8x256xf32>,
    %c176 = arith.constant 176 : index
    %c0_48 = arith.constant 0 : index
    %71 = vector.load %arg2[%c176, %c0_48] : memref<256x32xf32, #tpu.memory_space<vmem>>, vector<32x8xf32>
    %cst_49 = arith.constant dense<0.000000e+00> : vector<32x256xf32>
    %72 = tpu.matmul %71, %69, %cst_49 {dimension_numbers = #tpu.dot_dimension_numbers<[1], [0], [0], [1], [0, 0, 1, 1], [], []>} : vector<32x8xf32>, vector<8x256xf32>, vector<32x256xf32> -> vector<32x256xf32>
    %c144 = arith.constant 144 : index
    %c0_50 = arith.constant 0 : index
    %73 = vector.load %arg3[%c144, %c0_50] : memref<192x1xf32, #tpu.memory_space<vmem>>, vector<32x1xf32>
    %74 = vector.broadcast %73 : vector<32x1xf32> to vector<32x256xf32>
    %75 = arith.addf %72, %74 : vector<32x256xf32>
    %76 = arith.addf %75, %31 : vector<32x256xf32>
    %cst_51 = arith.constant 2.000000e-01 : f32
    %77 = vector.broadcast %cst_51 : f32 to vector<32x256xf32>
    %78 = arith.mulf %77, %76 : vector<32x256xf32>
    %79 = arith.maximumf %76, %78 : vector<32x256xf32>
    %c240 = arith.constant 240 : index
    %c0_52 = arith.constant 0 : index
    %80 = vector.load %arg2[%c240, %c0_52] : memref<256x32xf32, #tpu.memory_space<vmem>>, vector<16x32xf32>
    %cst_53 = arith.constant dense<0.000000e+00> : vector<16x256xf32>
    %81 = tpu.matmul %80, %79, %cst_53 {dimension_numbers = #tpu.dot_dimension_numbers<[1], [0], [0], [1], [0, 0, 1, 1], [], []>} : vector<16x32xf32>, vector<32x256xf32>, vector<16x256xf32> -> vector<16x256xf32>
    %c176_54 = arith.constant 176 : index
    %c0_55 = arith.constant 0 : index
    %82 = vector.load %arg3[%c176_54, %c0_55] : memref<192x1xf32, #tpu.memory_space<vmem>>, vector<16x1xf32>
    %83 = vector.broadcast %82 : vector<16x1xf32> to vector<16x256xf32>
    %84 = arith.addf %81, %83 : vector<16x256xf32>
    %c48_56 = arith.constant 48 : index
    %c0_57 = arith.constant 0 : index
    %85 = vector.load %arg4[%c48_56, %c0_57] : memref<96x256xf32, #tpu.memory_space<vmem>>, vector<16x256xf32>
    tpu.vector_store %arg4[%c48_56, %c0_57], %84 {strides = array<i32>} : memref<96x256xf32, #tpu.memory_space<vmem>>, vector<16x256xf32>,
    return
  }
  func.func @transform_0(%arg0: i32) -> (i32, i32) {
    %c0_i32 = arith.constant 0 : i32
    %c0_i32_0 = arith.constant 0 : i32
    %c0_i32_1 = arith.constant 0 : i32
    return %c0_i32, %c0_i32_0 : i32, i32
  }
  func.func @transform_1(%arg0: i32) -> (i32, i32) {
    %c0_i32 = arith.constant 0 : i32
    %c0_i32_0 = arith.constant 0 : i32
    %c0_i32_1 = arith.constant 0 : i32
    return %c0_i32, %c0_i32_0 : i32, i32
  }
  func.func @transform_2(%arg0: i32) -> (i32, i32) {
    %c0_i32 = arith.constant 0 : i32
    %c0_i32_0 = arith.constant 0 : i32
    %c0_i32_1 = arith.constant 0 : i32
    return %c0_i32, %c0_i32_0 : i32, i32
  }
  func.func @transform_3(%arg0: i32) -> (i32, i32) {
    %c0_i32 = arith.constant 0 : i32
    %c0_i32_0 = arith.constant 0 : i32
    %c0_i32_1 = arith.constant 0 : i32
    return %c0_i32, %c0_i32_0 : i32, i32
  }
}

</mosaic_0001>

<bundles_post_ra>
// kernel: tpu_custom_call.1
= control target key start
LH: loop header
LB: loop body
LE: loop exit
PB: predicated region body
PF: predicated region fallthrough
CT: control target
= control target key end

     0   :  { %v1444_v7 = vmov 0.0   ;;  %v1445_v8 = vmov 0   ;;  %vm61_vm0 = vcmask 261120   ;;  %s1781_s0 = inlined_call_operand.vmem [shape: f32[48,256], index: 0, kind: input, shape index: {}]   ;;  %s1782_s1 = inlined_call_operand.vmem [shape: f32[256,32], index: 1, kind: input, shape index: {}]   ;;  %s1783_s2 = inlined_call_operand.vmem [shape: f32[192,1], index: 2, kind: input, shape index: {}]   ;;  %s1784_s3 = inlined_call_operand.hbm [shape: f32[96,256], index: 3, kind: output, shape index: {}]  }
   0x1   :  { %v16_v0 = vld [vmem:[%s1781_s0 + $0x8] sm:$0xff]  ;;  %v18_v1 = vld [vmem:[%s1781_s0 + $0x18] sm:$0xff]  ;;  %v15_v2 = vld [vmem:[%s1781_s0] sm:$0xff]  ;;  %138 = vmatprep.mubr.f32.mxu0 %v1444_v7  ;;  %1410 = vset.pattern.permute.xlu0 %v1445_v8 }
   0x2   :  { %v1325_v3 = vpack.c.bf16 %v18_v1, %v16_v0  ;;  %v17_v4 = vld [vmem:[%s1781_s0 + $0x10] sm:$0xff]  ;;  %v20_v5 = vld [vmem:[%s1781_s0 + $0x28] sm:$0xff]  ;;  %v22_v6 = vld [vmem:[%s1781_s0 + $0x38] sm:$0xff]  ;;  %1411 = vset.pattern.permute.xlu1 %v1445_v8  ;;  %263 = vmatprep.mubr.f32.mxu1 %v1444_v7 }
   0x3   :  { %v1327_v9 = vpack.c.bf16 %v17_v4, %v15_v2  ;;  %v1488_v10 = vpack.c.bf16 %v22_v6, %v20_v5  ;;  %v19_v11 = vld [vmem:[%s1781_s0 + $0x20] sm:$0xff]  ;;  %v21_v12 = vld [vmem:[%s1781_s0 + $0x30] sm:$0xff]  ;;  %v38_v16 = vld [vmem:[%s1783_s2 + $0x8] sm:$0xff] }
   0x4   :  { %1326 = vmatprep.subr.bf16.mxu0 %v1325_v3  ;;  %v1497_v13 = vpack.c.bf16 %v21_v12, %v19_v11  ;;  %v37_v14 = vld [vmem:[%s1783_s2] sm:$0xff]  ;;  %v39_v15 = vld [vmem:[%s1783_s2 + $0x10] sm:$0xff]  ;;  %v40_v17 = vld [vmem:[%s1783_s2 + $0x18] sm:$0xff] }
   0x5   :  { %1328 = vmatpush1.bf16.msra.mxu0 %v1327_v9  ;;  %43 = vperm.xlu0 %1410, %v37_v14   ;;  %v33_v18 = vld [vmem:[%s1782_s1] sm:$0xff]  ;;  %v182_v19 = vld [vmem:[%s1783_s2 + $0x28] sm:$0xff] }
   0x6   :  { %1330 = vmatprep.subr.bf16.mxu0 %v1488_v10  ;;  %53 = vperm.xlu1 %1411, %v39_v15   ;;  %v181_v20 = vld [vmem:[%s1783_s2 + $0x20] sm:$0xff]  ;;  %v34_v21 = vld [vmem:[%s1782_s1 + $0x8] sm:$0xff] }
   0x9   :  { %1332 = vmatpush1.bf16.msra.mxu0 %v1497_v13  ;;  %48 = vperm.xlu0 %1410, %v38_v16  }
   0xa   :  { %58 = vperm.xlu1 %1411, %v40_v17  }
   0xc   :  { %1293 = vmatmul.mubr.msk.f32.vlgmr.msra.gmra.mrb[0].mxu0 %vm61_vm0, %v33_v18 }
   0xd   :  { %144 = vmatprep.mubr.f32.mxu0 %v1444_v7 }
   0xe   :  { %8 = vsyncpa [#allocation3], 0  ;;  %190 = vperm.xlu0 %1410, %v182_v19   ;;  %185 = vperm.xlu1 %1411, %v181_v20   ;;  %v511_v22 = vld [vmem:[%s1783_s2 + $0x30] sm:$0xff]  ;;  %v512_v23 = vld [vmem:[%s1783_s2 + $0x38] sm:$0xff]  ;;  %vm300_vm1 = vcmask 64512   ;;  %s1446_s8 = smov [#allocation2]  }
   0xf   :  { %v35_v24 = vld [vmem:[%s1782_s1 + $0x10] sm:$0xff]  ;;  %v513_v25 = vld [vmem:[%s1783_s2 + $0x40] sm:$0xff]  ;;  %v514_v26 = vld [vmem:[%s1783_s2 + $0x48] sm:$0xff]  ;;  %s1282_s9 = sshll.u32 %s1446_s8, 4  ;;  %s1283_s9 = int_to_ptr.vmem [resolvable:$true] %s1282_s9 }
  0x10   :  { %1294 = vmatmul.mubr.msk.f32.gmra.mrb[2].mxu0 %vm61_vm0, %v34_v21  ;;  %v36_v27 = vld [vmem:[%s1782_s1 + $0x18] sm:$0xff]  ;;  %v757_v28 = vld [vmem:[%s1783_s2 + $0x60] sm:$0xff]  ;;  %v758_v29 = vld [vmem:[%s1783_s2 + $0x68] sm:$0xff]  ;;  %p1425_p1 = scmp.lt.s32.totalorder %s1283_s9, %s1283_s9 }
  0x11   :  { %150 = vmatprep.mubr.f32.mxu0 %v1444_v7  ;;  %v759_v30 = vld [vmem:[%s1783_s2 + $0x70] sm:$0xff]  ;;  %v760_v31 = vld [vmem:[%s1783_s2 + $0x78] sm:$0xff]  ;;  %v909_v32 = vld [vmem:[%s1783_s2 + $0x88] sm:$0xff] }
  0x12   :  { %517 = vperm.xlu0 %1410, %v511_v22   ;;  %522 = vperm.xlu1 %1411, %v512_v23   ;;  %v908_v33 = vld [vmem:[%s1783_s2 + $0x80] sm:$0xff]  ;;  %v1027_v34 = vld [vmem:[%s1783_s2 + $0x90] sm:$0xff]  ;;  %v1028_v35 = vld [vmem:[%s1783_s2 + $0x98] sm:$0xff] }
  0x13   :  { %v1029_v36 = vld [vmem:[%s1783_s2 + $0xa0] sm:$0xff]  ;;  %v1030_v37 = vld [vmem:[%s1783_s2 + $0xa8] sm:$0xff]  ;;  %v654_v38 = vld [vmem:[%s1783_s2 + $0x50] sm:$0xff] }
  0x14   :  { %1295 = vmatmul.mubr.msk.f32.gmra.mrb[4].mxu0 %vm61_vm0, %v35_v24  ;;  %v655_v39 = vld [vmem:[%s1783_s2 + $0x58] sm:$0xff]  ;;  %v1178_v40 = vld [vmem:[%s1783_s2 + $0xb0] sm:$0xff]  ;;  %v179_v21 = vld [vmem:[%s1782_s1 + $0x20] sm:$0xff] }
  0x15   :  { %156 = vmatprep.mubr.f32.mxu0 %v1444_v7  ;;  %v1179_v41 = vld [vmem:[%s1783_s2 + $0xb8] sm:$0xff]  ;;  %v180_v22 = vld [vmem:[%s1782_s1 + $0x28] sm:$0xff] }
  0x16   :  { %527 = vperm.xlu0 %1410, %v513_v25   ;;  %532 = vperm.xlu1 %1411, %v514_v26  }
  0x18   :  { %1296 = vmatmul.mubr.msk.f32.gmra.mrb[6].mxu0 %vm61_vm0, %v36_v27 }
  0x19   :  { %482 = vmatprep.mubr.f32.mxu0 %v1444_v7 }
  0x1a   :  { %763 = vperm.xlu0 %1410, %v757_v28   ;;  %768 = vperm.xlu1 %1411, %v758_v29  }
  0x1e   :  { %773 = vperm.xlu0 %1410, %v759_v30   ;;  %778 = vperm.xlu1 %1411, %v760_v31  }
  0x22   :  { %917 = vperm.xlu0 %1410, %v909_v32   ;;  %912 = vperm.xlu1 %1411, %v908_v33  }
  0x26   :  { %1033 = vperm.xlu0 %1410, %v1027_v34   ;;  %1038 = vperm.xlu1 %1411, %v1028_v35  }
  0x2a   :  { %1043 = vperm.xlu0 %1410, %v1029_v36   ;;  %1048 = vperm.xlu1 %1411, %v1030_v37   ;;  %v31_v37 = vld [vmem:[%s1781_s0 + $0x40] sm:$0xff] }
  0x2e   :  { %658 = vperm.xlu0 %1410, %v654_v38   ;;  %663 = vperm.xlu1 %1411, %v655_v39   ;;  %v32_v38 = vld [vmem:[%s1781_s0 + $0x48] sm:$0xff] }
  0x32   :  { %1182 = vperm.xlu0 %1410, %v1178_v40   ;;  %1187 = vperm.xlu1 %1411, %v1179_v41  }
  0x84   :  { %v44_v42 = vpop.permute.xlu0 %43 }
  0x85   :  { %v54_v52 = vpop.permute.xlu1 %53 }
  0x88   :  { %v49_v47 = vpop.permute.xlu0 %48 }
  0x89   :  { %v59_v2 = vpop.permute.xlu1 %58 }
  0x8d   :  { %v186_v23 = vpop.permute.xlu1 %185  ;;  %v191_v28 = vpop.permute.xlu0 %190 }
  0xdf   :  { %v140_v43 = vpop.f32.mrb[0].mxu0 }
  0xe0   :  { %v141_v44 = vadd.f32 %v140_v43, %v44_v42  ;;  %v142_v45 = vpop.f32.mrb[1].mxu0 }
  0xe1   :  { %v143_v46 = vadd.f32 %v142_v45, %v44_v42 }
  0xe2   :  { %v163_v49 = vmul.f32 0.2, %v141_v44 }
  0xe3   :  { %v146_v48 = vpop.f32.mrb[2].mxu0  ;;  %v164_v53 = vmul.f32 0.2, %v143_v46 }
  0xe4   :  { %v147_v50 = vadd.f32 %v146_v48, %v49_v47  ;;  %v148_v51 = vpop.f32.mrb[3].mxu0  ;;  %v171_v58 = vmax.f32 %v141_v44, %v163_v49  ;;  %v297_v48 = vld [vmem:[%s1782_s1 + $0x88] sm:$0xff]  ;;  %v298_v49 = vld [vmem:[%s1782_s1 + $0x90] sm:$0xff] }
  0xe5   :  { %v149_v54 = vadd.f32 %v148_v51, %v49_v47  ;;  %v172_v63 = vmax.f32 %v143_v46, %v164_v53  ;;  %v296_v47 = vld [vmem:[%s1782_s1 + $0x80] sm:$0xff]  ;;  %v507_v51 = vld [vmem:[%s1782_s1 + $0x30] sm:$0xff] }
  0xe6   :  { %v165_v55 = vmul.f32 0.2, %v147_v50  ;;  %v1642_v53 = vld [vmem:[%s1781_s0 + $0x50] sm:$0xff] }
  0xe7   :  { %v166_v56 = vmul.f32 0.2, %v149_v54  ;;  %v152_v57 = vpop.f32.mrb[4].mxu0 }
  0xe8   :  { %v173_v59 = vmax.f32 %v147_v50, %v165_v55  ;;  %v153_v60 = vadd.f32 %v152_v57, %v54_v52  ;;  %v154_v61 = vpop.f32.mrb[5].mxu0  ;;  %v299_v50 = vld [vmem:[%s1782_s1 + $0x98] sm:$0xff]  ;;  %v1355_v55 = vpack.c.bf16 %v1642_v53, %v31_v37  ;;  %v753_v57 = vld [vmem:[%s1782_s1 + $0x60] sm:$0xff] }
  0xe9   :  { %v155_v62 = vadd.f32 %v154_v61, %v54_v52  ;;  %v174_v0 = vmax.f32 %v149_v54, %v166_v56  ;;  %v508_v54 = vld [vmem:[%s1782_s1 + $0x38] sm:$0xff]  ;;  %v509_v56 = vld [vmem:[%s1782_s1 + $0x40] sm:$0xff]  ;;  %v402_v61 = vld [vmem:[%s1782_s1 + $0xd0] sm:$0xff] }
  0xea   :  { %v1335_v1 = vpack.c.bf16 %v173_v59, %v171_v58  ;;  %v167_v5 = vmul.f32 0.2, %v153_v60  ;;  %v754_v58 = vld [vmem:[%s1782_s1 + $0x68] sm:$0xff]  ;;  %v755_v59 = vld [vmem:[%s1782_s1 + $0x70] sm:$0xff] }
  0xeb   :  { %v158_v3 = vpop.f32.mrb[6].mxu0  ;;  %v1333_v4 = vpack.c.bf16 %v174_v0, %v172_v63  ;;  %v168_v9 = vmul.f32 0.2, %v155_v62  ;;  %v404_v63 = vld [vmem:[%s1782_s1 + $0xe0] sm:$0xff]  ;;  %v405_v0 = vld [vmem:[%s1782_s1 + $0xe8] sm:$0xff] }
  0xec   :  { %v159_v6 = vadd.f32 %v158_v3, %v59_v2  ;;  %v160_v8 = vpop.f32.mrb[7].mxu0  ;;  %v175_v15 = vmax.f32 %v153_v60, %v167_v5  ;;  %v756_v60 = vld [vmem:[%s1782_s1 + $0x78] sm:$0xff] }
  0xed   :  { %v161_v11 = vadd.f32 %v160_v8, %v59_v2  ;;  %1334 = vmatprep.subr.bf16.mxu1 %v1333_v4  ;;  %v176_v17 = vmax.f32 %v155_v62, %v168_v9  ;;  %v403_v62 = vld [vmem:[%s1782_s1 + $0xd8] sm:$0xff] }
  0xee   :  { %v169_v12 = vmul.f32 0.2, %v159_v6  ;;  %1336 = vmatpush1.bf16.msra.mxu1 %v1335_v1  ;;  %v518_v1 = vpop.permute.xlu0 %517 }
  0xef   :  { %v170_v14 = vmul.f32 0.2, %v161_v11 }
  0xf0   :  { %v177_v16 = vmax.f32 %v159_v6, %v169_v12  ;;  %v523_v6 = vpop.permute.xlu1 %522 }
  0xf1   :  { %v178_v18 = vmax.f32 %v161_v11, %v170_v14 }
  0xf2   :  { %v1339_v19 = vpack.c.bf16 %v177_v16, %v175_v15 }
  0xf3   :  { %v1337_v20 = vpack.c.bf16 %v178_v18, %v176_v17  ;;  %v528_v17 = vpop.permute.xlu0 %527 }
  0xf5   :  { %1338 = vmatprep.subr.bf16.mxu1 %v1337_v20 }
  0xf6   :  { %1340 = vmatpush1.bf16.msra.mxu1 %v1339_v19 }
  0xf9   :  { %1297 = vmatmul.mubr.msk.f32.vlgmr.msra.gmra.mrb[0].mxu1 %vm61_vm0, %v179_v21 }
  0xfa   :  { %269 = vmatprep.mubr.f32.mxu1 %v1444_v7 }
  0xfd   :  { %1298 = vmatmul.mubr.msk.f32.gmra.mrb[2].mxu1 %vm61_vm0, %v180_v22 }
  0xfe   :  { %377 = vmatprep.mubr.f32.mxu1 %v1444_v7 }
 0x1cc   :  { %v265_v24 = vpop.f32.mrb[0].mxu1 }
 0x1cd   :  { %v266_v25 = vadd.f32 %v265_v24, %v186_v23  ;;  %v267_v26 = vpop.f32.mrb[1].mxu1 }
 0x1ce   :  { %v268_v27 = vadd.f32 %v267_v26, %v186_v23 }
 0x1cf   :  { %276 = vst [vmem:[#allocation2 + $0x30] sm:$0xff] %v266_v25 }
 0x1d0   :  { %277 = vst [vmem:[#allocation2 + $0x38] sm:$0xff] %v268_v27  ;;  %v271_v29 = vpop.f32.mrb[2].mxu1 }
 0x1d1   :  { %v272_v30 = vadd.f32 %v271_v29, %v191_v28  ;;  %v273_v31 = vpop.f32.mrb[3].mxu1 }
 0x1d2   :  { %v274_v32 = vadd.f32 %v273_v31, %v191_v28  ;;  %v533_v28 = vpop.permute.xlu1 %532 }
 0x1d3   :  { %278 = vst [vmem:[#allocation2 + $0x40] sm:$0xff] %v272_v30  ;;  %v280_v33 = vmul.f32 0.5, %v272_v30 }
 0x1d4   :  { %279 = vst [vmem:[#allocation2 + $0x48] sm:$0xff] %v274_v32  ;;  %v281_v34 = vmul.f32 0.5, %v274_v32 }
 0x1d5   :  { %v282_v35 = vmul.f32 1.442695, %v280_v33 }
 0x1d6   :  { %v284_v36 = vmul.f32 1.442695, %v281_v34 }
 0x1d7   :  { %1412 = vpow2.f32 %v282_v35 }
 0x1d8   :  { %1414 = vpow2.f32 %v284_v36 }
 0x1e1   :  { %v1413_v39 = vpop.eup %1412 }
 0x1e2   :  { %v1415_v40 = vpop.eup %1414  ;;  %v286_v41 = vmul.f32 %v1413_v39, %v1413_v39  ;;  %v290_v42 = vmul.f32 %v1413_v39, %v31_v37  ;;  %v764_v37 = vpop.permute.xlu0 %763 }
 0x1e3   :  { %v287_v43 = vmul.f32 %v1415_v40, %v1415_v40  ;;  %v291_v44 = vmul.f32 %v1415_v40, %v32_v38 }
 0x1e4   :  { %288 = vst [vmem:[#allocation2 + $0x50] sm:$0xff] %v286_v41  ;;  %v292_v45 = vadd.f32 %v290_v42, %v266_v25 }
 0x1e5   :  { %289 = vst [vmem:[#allocation2 + $0x58] sm:$0xff] %v287_v43  ;;  %v293_v46 = vadd.f32 %v291_v44, %v268_v27 }
 0x1e6   :  { %294 = vst [vmem:[#allocation2 + $0x20] sm:$0xff] %v292_v45 }
 0x1e7   :  { %295 = vst [vmem:[#allocation2 + $0x28] sm:$0xff] %v293_v46  ;;  %313 = vmatprep.subr.mxu1 %v293_v46  ;;  %418 = vmatprep.subr.mxu0 %v293_v46 }
 0x1e8   :  { %314 = vmatpush1.msra.mxu1 %v292_v45  ;;  %419 = vmatpush1.msra.mxu0 %v292_v45 }
 0x1e9   :  { %1299 = vmatmul.mubr.msk.f32.vlgmr.msra.gmra.mrb[4].mxu1 %vm300_vm1, %v296_v47  ;;  %547 = vmatprep.subr.mxu1 %v293_v46 }
 0x1ea   :  { %548 = vmatpush1.msra.mxu1 %v292_v45  ;;  %383 = vmatprep.mubr.f32.mxu1 %v1444_v7 }
 0x1eb   :  { %1350 = vmatprep.subr.bf16.mxu1 %v1488_v10  ;;  %v1631_v10 = vld [vmem:[%s1781_s0 + $0x58] sm:$0xff]  ;;  %1303 = vmatmul.mubr.msk.f32.vlgmr.msra.gmra.mrb[8].mxu0 %vm300_vm1, %v402_v61 }
 0x1ec   :  { %v1353_v52 = vpack.c.bf16 %v1631_v10, %v32_v38  ;;  %488 = vmatprep.mubr.f32.mxu0 %v1444_v7 }
 0x1ed   :  { %1300 = vmatmul.mubr.msk.f32.gmra.mrb[6].mxu1 %vm300_vm1, %v297_v48  ;;  %v769_v48 = vpop.permute.xlu1 %768 }
 0x1ee   :  { %389 = vmatprep.mubr.f32.mxu1 %v1444_v7 }
 0x1ef   :  { %1304 = vmatmul.mubr.msk.f32.gmra.mrb[10].mxu0 %vm300_vm1, %v403_v62 }
 0x1f0   :  { %494 = vmatprep.mubr.f32.mxu0 %v1444_v7 }
 0x1f1   :  { %1301 = vmatmul.mubr.msk.f32.gmra.mrb[8].mxu1 %vm300_vm1, %v298_v49 }
 0x1f2   :  { %395 = vmatprep.mubr.f32.mxu1 %v1444_v7 }
 0x1f3   :  { %1305 = vmatmul.mubr.msk.f32.gmra.mrb[12].mxu0 %vm300_vm1, %v404_v63 }
 0x1f4   :  { %500 = vmatprep.mubr.f32.mxu0 %v1444_v7 }
 0x1f5   :  { %1302 = vmatmul.mubr.msk.f32.gmra.mrb[10].mxu1 %vm300_vm1, %v299_v50 }
 0x1f6   :  { %611 = vmatprep.mubr.f32.mxu1 %v1444_v7 }
 0x1f7   :  { %1306 = vmatmul.mubr.msk.f32.gmra.mrb[14].mxu0 %vm300_vm1, %v405_v0 }
 0x1f8   :  { %736 = vmatprep.mubr.f32.mxu0 %v1444_v7 }
 0x1f9   :  { %1307 = vmatmul.mubr.msk.f32.vlgmr.msra.gmra.mrb[12].mxu1 %vm300_vm1, %v507_v51 }
 0x1fa   :  { %617 = vmatprep.mubr.f32.mxu1 %v1444_v7  ;;  %1352 = vmatpush1.bf16.msra.mxu1 %v1497_v13  ;;  %v510_v13 = vld [vmem:[%s1782_s1 + $0x48] sm:$0xff] }
 0x1fb   :  { %1354 = vmatprep.subr.bf16.mxu1 %v1353_v52 }
 0x1fd   :  { %1308 = vmatmul.mubr.msk.f32.gmra.mrb[14].mxu1 %vm300_vm1, %v508_v54 }
 0x1fe   :  { %623 = vmatprep.mubr.f32.mxu1 %v1444_v7  ;;  %1356 = vmatpush1.bf16.msra.mxu1 %v1355_v55 }
 0x201   :  { %1309 = vmatmul.mubr.msk.f32.gmra.mrb[16].mxu1 %vm300_vm1, %v509_v56 }
 0x202   :  { %629 = vmatprep.mubr.f32.mxu1 %v1444_v7 }
 0x205   :  { %1310 = vmatmul.mubr.msk.f32.gmra.mrb[18].mxu1 %vm300_vm1, %v510_v13 }
 0x206   :  { %857 = vmatprep.mubr.f32.mxu1 %v1444_v7 }
 0x209   :  { %1313 = vmatmul.mubr.msk.f32.vlgmr.msra.gmra.mrb[4].mxu1 %vm61_vm0, %v753_v57  ;;  %v652_v57 = vld [vmem:[%s1782_s1 + $0x50] sm:$0xff] }
 0x20a   :  { %863 = vmatprep.mubr.f32.mxu1 %v1444_v7 }
 0x20d   :  { %1314 = vmatmul.mubr.msk.f32.gmra.mrb[6].mxu1 %vm61_vm0, %v754_v58  ;;  %v774_v58 = vpop.permute.xlu0 %773 }
 0x20e   :  { %869 = vmatprep.mubr.f32.mxu1 %v1444_v7 }
 0x211   :  { %1315 = vmatmul.mubr.msk.f32.gmra.mrb[8].mxu1 %vm61_vm0, %v755_v59 }
 0x212   :  { %875 = vmatprep.mubr.f32.mxu1 %v1444_v7 }
 0x215   :  { %1316 = vmatmul.mubr.msk.f32.gmra.mrb[10].mxu1 %vm61_vm0, %v756_v60 }
 0x216   :  { %1260 = vmatprep.mubr.f32.mxu1 %v1444_v7 }
 0x2cc   :  { %v613_v2 = vpop.f32.mrb[12].mxu1 }
 0x2cd   :  { %v614_v3 = vadd.f32 %v613_v2, %v518_v1  ;;  %v615_v4 = vpop.f32.mrb[13].mxu1 }
 0x2ce   :  { %v616_v5 = vadd.f32 %v615_v4, %v518_v1 }
 0x2cf   :  { %v636_v9 = vmul.f32 0.2, %v614_v3 }
 0x2d0   :  { %v619_v8 = vpop.f32.mrb[14].mxu1  ;;  %v637_v14 = vmul.f32 0.2, %v616_v5 }
 0x2d1   :  { %v620_v11 = vadd.f32 %v619_v8, %v523_v6  ;;  %v621_v12 = vpop.f32.mrb[15].mxu1  ;;  %v644_v20 = vmax.f32 %v614_v3, %v636_v9 }
 0x2d2   :  { %v622_v15 = vadd.f32 %v621_v12, %v523_v6  ;;  %v645_v24 = vmax.f32 %v616_v5, %v637_v14  ;;  %v653_v5 = vld [vmem:[%s1782_s1 + $0x58] sm:$0xff]  ;;  %v779_v6 = vpop.permute.xlu1 %778 }
 0x2d3   :  { %v638_v16 = vmul.f32 0.2, %v620_v11 }
 0x2d4   :  { %v639_v18 = vmul.f32 0.2, %v622_v15  ;;  %v625_v19 = vpop.f32.mrb[16].mxu1 }
 0x2d5   :  { %v646_v21 = vmax.f32 %v620_v11, %v638_v16  ;;  %v626_v22 = vadd.f32 %v625_v19, %v528_v17  ;;  %v627_v23 = vpop.f32.mrb[17].mxu1 }
 0x2d6   :  { %v647_v25 = vmax.f32 %v622_v15, %v639_v18  ;;  %v628_v26 = vadd.f32 %v627_v23, %v528_v17 }
 0x2d7   :  { %v1343_v27 = vpack.c.bf16 %v646_v21, %v644_v20  ;;  %v640_v31 = vmul.f32 0.2, %v626_v22 }
 0x2d8   :  { %v631_v29 = vpop.f32.mrb[18].mxu1  ;;  %v1341_v30 = vpack.c.bf16 %v647_v25, %v645_v24  ;;  %v641_v34 = vmul.f32 0.2, %v628_v26  ;;  %v906_v25 = vld [vmem:[%s1782_s1 + $0xa0] sm:$0xff] }
 0x2d9   :  { %v632_v32 = vadd.f32 %v631_v29, %v533_v28  ;;  %v633_v33 = vpop.f32.mrb[19].mxu1  ;;  %v648_v40 = vmax.f32 %v626_v22, %v640_v31 }
 0x2da   :  { %v634_v35 = vadd.f32 %v633_v33, %v533_v28  ;;  %1342 = vmatprep.subr.bf16.mxu0 %v1341_v30  ;;  %v649_v44 = vmax.f32 %v628_v26, %v641_v34  ;;  %v907_v26 = vld [vmem:[%s1782_s1 + $0xa8] sm:$0xff]  ;;  %v913_v28 = vpop.permute.xlu1 %912 }
 0x2db   :  { %v642_v36 = vmul.f32 0.2, %v632_v32  ;;  %1344 = vmatpush1.bf16.msra.mxu0 %v1343_v27  ;;  %v918_v27 = vpop.permute.xlu0 %917 }
 0x2dc   :  { %v643_v38 = vmul.f32 0.2, %v634_v35  ;;  %v859_v39 = vpop.f32.mrb[4].mxu1 }
 0x2dd   :  { %v650_v41 = vmax.f32 %v632_v32, %v642_v36  ;;  %v860_v42 = vadd.f32 %v859_v39, %v764_v37  ;;  %v861_v43 = vpop.f32.mrb[5].mxu1 }
 0x2de   :  { %v651_v45 = vmax.f32 %v634_v35, %v643_v38  ;;  %v862_v46 = vadd.f32 %v861_v43, %v764_v37  ;;  %v1725_v30 = vpop.permute.xlu1 %1038 }
 0x2df   :  { %v1347_v47 = vpack.c.bf16 %v650_v41, %v648_v40  ;;  %v890_v51 = vmul.f32 0.2, %v860_v42  ;;  %v1723_v29 = vpop.permute.xlu0 %1033 }
 0x2e0   :  { %v865_v49 = vpop.f32.mrb[6].mxu1  ;;  %v1345_v50 = vpack.c.bf16 %v651_v45, %v649_v44  ;;  %v891_v55 = vmul.f32 0.2, %v862_v46 }
 0x2e1   :  { %v866_v52 = vadd.f32 %v865_v49, %v769_v48  ;;  %v867_v54 = vpop.f32.mrb[7].mxu1  ;;  %v898_v61 = vmax.f32 %v860_v42, %v890_v51 }
 0x2e2   :  { %v868_v56 = vadd.f32 %v867_v54, %v769_v48  ;;  %1346 = vmatprep.subr.bf16.mxu0 %v1345_v50  ;;  %v899_v1 = vmax.f32 %v862_v46, %v891_v55  ;;  %v1729_v32 = vpop.permute.xlu1 %1048 }
 0x2e3   :  { %v892_v13 = vmul.f32 0.2, %v866_v52  ;;  %1348 = vmatpush1.bf16.msra.mxu0 %v1347_v47  ;;  %v1727_v31 = vpop.permute.xlu0 %1043 }
 0x2e4   :  { %v893_v59 = vmul.f32 0.2, %v868_v56  ;;  %v871_v60 = vpop.f32.mrb[8].mxu1 }
 0x2e5   :  { %v900_v62 = vmax.f32 %v866_v52, %v892_v13  ;;  %v872_v63 = vadd.f32 %v871_v60, %v774_v58  ;;  %v873_v0 = vpop.f32.mrb[9].mxu1 }
 0x2e6   :  { %v901_v2 = vmax.f32 %v868_v56, %v893_v59  ;;  %v874_v3 = vadd.f32 %v873_v0, %v774_v58  ;;  %1311 = vmatmul.mubr.msk.f32.vlgmr.msra.gmra.mrb[16].mxu0 %vm61_vm0, %v652_v57  ;;  %v664_v38 = vpop.permute.xlu1 %663  ;;  %v1026_v0 = vld [vmem:[%s1782_s1 + $0xc8] sm:$0xff] }
 0x2e7   :  { %v1359_v4 = vpack.c.bf16 %v900_v62, %v898_v61  ;;  %742 = vmatprep.mubr.f32.mxu0 %v1444_v7  ;;  %v894_v11 = vmul.f32 0.2, %v872_v63  ;;  %v659_v33 = vpop.permute.xlu0 %658 }
 0x2e8   :  { %v877_v8 = vpop.f32.mrb[10].mxu1  ;;  %v1357_v9 = vpack.c.bf16 %v901_v2, %v899_v1  ;;  %v895_v15 = vmul.f32 0.2, %v874_v3 }
 0x2e9   :  { %v878_v12 = vadd.f32 %v877_v8, %v779_v6  ;;  %v879_v14 = vpop.f32.mrb[11].mxu1  ;;  %v902_v19 = vmax.f32 %v872_v63, %v894_v11  ;;  %v1023_v63 = vld [vmem:[%s1782_s1 + $0xb0] sm:$0xff] }
 0x2ea   :  { %v880_v16 = vadd.f32 %v879_v14, %v779_v6  ;;  %1312 = vmatmul.mubr.msk.f32.gmra.mrb[18].mxu0 %vm61_vm0, %v653_v5  ;;  %1358 = vmatprep.subr.bf16.mxu0 %v1357_v9  ;;  %v903_v21 = vmax.f32 %v874_v3, %v895_v15 }
 0x2eb   :  { %v896_v17 = vmul.f32 0.2, %v878_v12  ;;  %1360 = vmatpush1.bf16.msra.mxu0 %v1359_v4  ;;  %990 = vmatprep.mubr.f32.mxu0 %v1444_v7 }
 0x2ec   :  { %v897_v18 = vmul.f32 0.2, %v880_v16 }
 0x2ed   :  { %v904_v20 = vmax.f32 %v878_v12, %v896_v17 }
 0x2ee   :  { %v905_v22 = vmax.f32 %v880_v16, %v897_v18 }
 0x2ef   :  { %v1363_v23 = vpack.c.bf16 %v904_v20, %v902_v19 }
 0x2f0   :  { %v1361_v24 = vpack.c.bf16 %v905_v22, %v903_v21 }
 0x2f2   :  { %1362 = vmatprep.subr.bf16.mxu0 %v1361_v24 }
 0x2f3   :  { %1364 = vmatpush1.bf16.msra.mxu0 %v1363_v23 }
 0x2f6   :  { %1317 = vmatmul.mubr.msk.f32.vlgmr.msra.gmra.mrb[20].mxu0 %vm61_vm0, %v906_v25 }
 0x2f7   :  { %996 = vmatprep.mubr.f32.mxu0 %v1444_v7 }
 0x2fa   :  { %1318 = vmatmul.mubr.msk.f32.gmra.mrb[22].mxu0 %vm61_vm0, %v907_v26 }
 0x2fb   :  { %1127 = vmatprep.mubr.f32.mxu0 %v1444_v7 }
 0x3b9   :  { %v738_v34 = vpop.f32.mrb[16].mxu0 }
 0x3ba   :  { %v739_v35 = vadd.f32 %v738_v34, %v659_v33  ;;  %v740_v36 = vpop.f32.mrb[17].mxu0 }
 0x3bb   :  { %v741_v37 = vadd.f32 %v740_v36, %v659_v33 }
 0x3bc   :  { %749 = vst [vmem:[#allocation2] sm:$0xff] %v739_v35 }
 0x3bd   :  { %750 = vst [vmem:[#allocation2 + $0x8] sm:$0xff] %v741_v37  ;;  %v744_v39 = vpop.f32.mrb[18].mxu0 }
 0x3be   :  { %v745_v40 = vadd.f32 %v744_v39, %v664_v38  ;;  %v746_v41 = vpop.f32.mrb[19].mxu0 }
 0x3bf   :  { %v747_v42 = vadd.f32 %v746_v41, %v664_v38  ;;  %v1176_v41 = vld [vmem:[%s1782_s1 + $0xf0] sm:$0xff] }
 0x3c0   :  { %751 = vst [vmem:[#allocation2 + $0x10] sm:$0xff] %v745_v40 }
 0x3c1   :  { %752 = vst [vmem:[#allocation2 + $0x18] sm:$0xff] %v747_v42  ;;  %v1183_v42 = vpop.permute.xlu0 %1182 }
 0x3c9   :  { %v992_v43 = vpop.f32.mrb[20].mxu0 }
 0x3ca   :  { %v993_v44 = vadd.f32 %v992_v43, %v913_v28  ;;  %v994_v45 = vpop.f32.mrb[21].mxu0 }
 0x3cb   :  { %v995_v46 = vadd.f32 %v994_v45, %v913_v28 }
 0x3cc   :  { %1003 = vst [vmem:[#allocation2 + $0x90] sm:$0xff] %v993_v44 }
 0x3cd   :  { %1004 = vst [vmem:[#allocation2 + $0x98] sm:$0xff] %v995_v46  ;;  %v998_v47 = vpop.f32.mrb[22].mxu0 }
 0x3ce   :  { %v999_v48 = vadd.f32 %v998_v47, %v918_v27  ;;  %v1000_v49 = vpop.f32.mrb[23].mxu0  ;;  %v1188_v47 = vpop.permute.xlu1 %1187 }
 0x3cf   :  { %v1001_v50 = vadd.f32 %v1000_v49, %v918_v27 }
 0x3d0   :  { %1005 = vst [vmem:[#allocation2 + $0xa0] sm:$0xff] %v999_v48  ;;  %v1007_v51 = vmul.f32 0.5, %v999_v48 }
 0x3d1   :  { %1006 = vst [vmem:[#allocation2 + $0xa8] sm:$0xff] %v1001_v50  ;;  %v1008_v52 = vmul.f32 0.5, %v1001_v50 }
 0x3d2   :  { %v1009_v54 = vmul.f32 1.442695, %v1007_v51 }
 0x3d3   :  { %v1011_v55 = vmul.f32 1.442695, %v1008_v52 }
 0x3d4   :  { %1416 = vpow2.f32 %v1009_v54 }
 0x3d5   :  { %1418 = vpow2.f32 %v1011_v55 }
 0x3de   :  { %v1417_v56 = vpop.eup %1416 }
 0x3df   :  { %v1419_v13 = vpop.eup %1418  ;;  %v1013_v57 = vmul.f32 %v1417_v56, %v1417_v56  ;;  %v1017_v58 = vmul.f32 %v1417_v56, %v1642_v53  ;;  %v1025_v53 = vld [vmem:[%s1782_s1 + $0xc0] sm:$0xff] }
 0x3e0   :  { %v1014_v59 = vmul.f32 %v1419_v13, %v1419_v13  ;;  %v1018_v60 = vmul.f32 %v1419_v13, %v1631_v10  ;;  %v1024_v10 = vld [vmem:[%s1782_s1 + $0xb8] sm:$0xff] }
 0x3e1   :  { %1015 = vst [vmem:[#allocation2 + $0xb0] sm:$0xff] %v1013_v57  ;;  %v1019_v61 = vadd.f32 %v1017_v58, %v993_v44 }
 0x3e2   :  { %1016 = vst [vmem:[#allocation2 + $0xb8] sm:$0xff] %v1014_v59  ;;  %v1020_v62 = vadd.f32 %v1018_v60, %v995_v46 }
 0x3e3   :  { %1021 = vst [vmem:[#allocation2 + $0x80] sm:$0xff] %v1019_v61 }
 0x3e4   :  { %1022 = vst [vmem:[#allocation2 + $0x88] sm:$0xff] %v1020_v62  ;;  %1063 = vmatprep.subr.mxu0 %v1020_v62 }
 0x3e5   :  { %1064 = vmatpush1.msra.mxu0 %v1019_v61 }
 0x3e6   :  { %1319 = vmatmul.mubr.msk.f32.vlgmr.msra.gmra.mrb[8].mxu0 %vm300_vm1, %v1023_v63 }
 0x3e7   :  { %1133 = vmatprep.mubr.f32.mxu0 %v1444_v7 }
 0x3ea   :  { %1320 = vmatmul.mubr.msk.f32.gmra.mrb[10].mxu0 %vm300_vm1, %v1024_v10 }
 0x3eb   :  { %1139 = vmatprep.mubr.f32.mxu0 %v1444_v7 }
 0x3ee   :  { %1321 = vmatmul.mubr.msk.f32.gmra.mrb[12].mxu0 %vm300_vm1, %v1025_v53 }
 0x3ef   :  { %1145 = vmatprep.mubr.f32.mxu0 %v1444_v7 }
 0x3f2   :  { %1322 = vmatmul.mubr.msk.f32.gmra.mrb[14].mxu0 %vm300_vm1, %v1026_v0 }
 0x4b9   :  { %v1129_v1 = vpop.f32.mrb[8].mxu0 }
 0x4ba   :  { %v1130_v2 = vadd.f32 %v1129_v1, %v1723_v29  ;;  %v1131_v3 = vpop.f32.mrb[9].mxu0 }
 0x4bb   :  { %v1132_v4 = vadd.f32 %v1131_v3, %v1723_v29 }
 0x4bc   :  { %v1160_v6 = vmul.f32 0.2, %v1130_v2 }
 0x4bd   :  { %v1135_v5 = vpop.f32.mrb[10].mxu0  ;;  %v1161_v11 = vmul.f32 0.2, %v1132_v4 }
 0x4be   :  { %v1136_v8 = vadd.f32 %v1135_v5, %v1725_v30  ;;  %v1137_v9 = vpop.f32.mrb[11].mxu0  ;;  %v1168_v17 = vmax.f32 %v1130_v2, %v1160_v6 }
 0x4bf   :  { %v1138_v12 = vadd.f32 %v1137_v9, %v1725_v30  ;;  %v1169_v21 = vmax.f32 %v1132_v4, %v1161_v11 }
 0x4c0   :  { %v1162_v14 = vmul.f32 0.2, %v1136_v8 }
 0x4c1   :  { %v1163_v15 = vmul.f32 0.2, %v1138_v12  ;;  %v1141_v16 = vpop.f32.mrb[12].mxu0 }
 0x4c2   :  { %v1170_v18 = vmax.f32 %v1136_v8, %v1162_v14  ;;  %v1142_v19 = vadd.f32 %v1141_v16, %v1727_v31  ;;  %v1143_v20 = vpop.f32.mrb[13].mxu0 }
 0x4c3   :  { %v1171_v22 = vmax.f32 %v1138_v12, %v1163_v15  ;;  %v1144_v23 = vadd.f32 %v1143_v20, %v1727_v31 }
 0x4c4   :  { %v1367_v24 = vpack.c.bf16 %v1170_v18, %v1168_v17  ;;  %v1164_v27 = vmul.f32 0.2, %v1142_v19 }
 0x4c5   :  { %v1147_v25 = vpop.f32.mrb[14].mxu0  ;;  %v1365_v26 = vpack.c.bf16 %v1171_v22, %v1169_v21  ;;  %v1165_v30 = vmul.f32 0.2, %v1144_v23 }
 0x4c6   :  { %v1148_v28 = vadd.f32 %v1147_v25, %v1729_v32  ;;  %v1149_v29 = vpop.f32.mrb[15].mxu0  ;;  %v1172_v36 = vmax.f32 %v1142_v19, %v1164_v27 }
 0x4c7   :  { %v1150_v33 = vadd.f32 %v1149_v29, %v1729_v32  ;;  %1366 = vmatprep.subr.bf16.mxu1 %v1365_v26  ;;  %v1173_v38 = vmax.f32 %v1144_v23, %v1165_v30  ;;  %v1177_v32 = vld [vmem:[%s1782_s1 + $0xf8] sm:$0xff]  ;;  %s1420_s1 = scalar_lea.vmem %s1283_s9, 3072 }
 0x4c8   :  { %v1166_v34 = vmul.f32 0.2, %v1148_v28  ;;  %1368 = vmatpush1.bf16.msra.mxu1 %v1367_v24  ;;  %p1421_p0 = scmp.ne.s32.totalorder %s1283_s9, %s1420_s1  ;;  %p1426_p2 = scmp.lt.s32.totalorder %s1420_s1, %s1420_s1 }
 0x4c9   :  { %v1167_v35 = vmul.f32 0.2, %v1150_v33 }
 0x4ca   :  { %v1174_v37 = vmax.f32 %v1148_v28, %v1166_v34  ;;  %p1427_p3 = por %p1426_p2, %p1425_p1 }
 0x4cb   :  { %v1175_v39 = vmax.f32 %v1150_v33, %v1167_v35 }
 0x4cc   :  { %v1371_v40 = vpack.c.bf16 %v1174_v37, %v1172_v36  ;;  %p1428_p4 = pnand %p1427_p3, %p1421_p0 }
 0x4cd   :  { %v1369_v31 = vpack.c.bf16 %v1175_v39, %v1173_v38 }
 0x4cf   :  { %1370 = vmatprep.subr.bf16.mxu1 %v1369_v31 }
 0x4d0   :  { %1372 = vmatpush1.bf16.msra.mxu1 %v1371_v40 }
 0x4d3   :  { %1323 = vmatmul.mubr.msk.f32.vlgmr.msra.gmra.mrb[20].mxu1 %vm61_vm0, %v1176_v41 }
 0x4d4   :  { %1266 = vmatprep.mubr.f32.mxu1 %v1444_v7 }
 0x4d7   :  { %1324 = vmatmul.mubr.msk.f32.gmra.mrb[22].mxu1 %vm61_vm0, %v1177_v32 }
 0x5a6   :  { %v1262_v43 = vpop.f32.mrb[20].mxu1 }
 0x5a7   :  { %v1263_v44 = vadd.f32 %v1262_v43, %v1183_v42  ;;  %v1264_v45 = vpop.f32.mrb[21].mxu1 }
 0x5a8   :  { %v1265_v46 = vadd.f32 %v1264_v45, %v1183_v42 }
 0x5a9   :  { %1273 = vst [vmem:[#allocation2 + $0x60] sm:$0xff] %v1263_v44 }
 0x5aa   :  { %1274 = vst [vmem:[#allocation2 + $0x68] sm:$0xff] %v1265_v46  ;;  %v1268_v48 = vpop.f32.mrb[22].mxu1 }
 0x5ab   :  { %v1269_v49 = vadd.f32 %v1268_v48, %v1188_v47  ;;  %v1270_v50 = vpop.f32.mrb[23].mxu1 }
 0x5ac   :  { %v1271_v7 = vadd.f32 %v1270_v50, %v1188_v47 }
 0x5ad   :  { %1275 = vst [vmem:[#allocation2 + $0x70] sm:$0xff] %v1269_v49 }
 0x5ae   :  { %1276 = vst [vmem:[#allocation2 + $0x78] sm:$0xff] %v1271_v7 }
 0x5af   :  { %1431 = shalt.err (!%p1428_p4)
}
 0x5b0   :  { %s1432_s12 = scalar_lea.hbm %s1784_s3, 3072 }
 0x5b1   :  { %p1433_p5 = scmp.ne.s32.totalorder %s1784_s3, %s1432_s12  ;;  %p1436_p6 = scmp.lt.u32.totalorder %s1432_s12, %s1784_s3 }
 0x5b3   :  { %p1438_p7 = pnand %p1436_p6, %p1433_p5 }
 0x5b5   :  { %1441 = shalt.err (!%p1438_p7)
}
 0x5b6   :  { %s1447_s17 = smov 256   ;;  %s1448_s18 = smov 16  }
 0x5b7   :  { %1288 = dma.vmem_to_hbm [thread:$0]  %s1283_s9, 3072, %s1784_s3, [#allocation3], %s1447_s17, %s1447_s17, %s1448_s18  }
 0x5b8   :  { %1442 = dma.done.wait [#allocation3], 3072  }
 0x5b9   :  { %1443 = vsyncadd [#allocation3], 4294964224 }
 0x5ba   :  { %1292 = vsyncpa [#allocation3], 1 }

</bundles_post_ra>
